<compile_context>
chip_gen: v5e
topology: v5e:2x2
jax: 0.10.0
libtpu: 0.0.40
codegen_flags: <defaults>
</compile_context>

<pallas_src>
import jax
import jax.numpy as jnp
from jax.experimental import pallas as pl
from jax.experimental.pallas import tpu as pltpu


def _round_up(x, m):
    return ((x + m - 1) // m) * m


def _chip_hint():
    try:
        return jax.devices()[0].device_kind.lower()
    except Exception:
        return ""


def _channel_uout_kernel(x_ref, s_ref, o_ref):
    # x_ref / o_ref: (row_tile, col_tile) tile of the flattened (N*C, H*W) slab.
    # s_ref: (row_tile, 1) column of per-row scales (= 1 + r_channel).
    o_ref[...] = x_ref[...] * s_ref[...]   # single sublane-broadcast VPU multiply


def channel_uout(x, key, p=1.0, training=True,
                 target_block_bytes=None,
                 min_cols_for_kernel=128,
                 in_place=False):
    """ChannelUOut forward: x * (1 + r_c) with r_c ~ U(-p, p) per channel (NCHW).

    `in_place=True` aliases the output onto the flattened input slab; only use it
    if the caller donates x (e.g. under jit with donate_argnums), otherwise the
    alias is dropped/defensively copied by XLA anyway.
    """
    if not training:
        return x

    n, c, h, w = x.shape
    dtype = x.dtype
    itemsize = jnp.dtype(dtype).itemsize

    # Per-channel uniform samples in f32 (matches the PyTorch module's sampler),
    # folded into a single scale (1 + r) and cast to the input dtype.
    r = jax.random.uniform(key, (c,), minval=-p, maxval=p, dtype=jnp.float32)
    scale_c = (1.0 + r).astype(dtype)                                  # (C,)

    rows, cols = n * c, h * w

    # Tiny spatial maps: launching a kernel is all overhead; let XLA fuse the
    # plain broadcast multiply instead.
    if cols < min_cols_for_kernel:
        return x * scale_c.reshape(1, c, 1, 1)

    x2 = x.reshape(rows, cols)
    scale2 = jnp.broadcast_to(scale_c[None, :], (n, c)).reshape(rows, 1)

    # ---- generation-aware knobs -------------------------------------------
    kind = _chip_hint()
    is_v7 = "v7" in kind
    multi_core = is_v7                       # 2 TensorCores per chip on v7x
    if target_block_bytes is None:
        # v6e measured sweep: ~85% of HBM roofline at 1-2 MiB tiles; v7x's
        # higher HBM BW makes the fixed per-step overhead relatively larger,
        # so use bigger blocks there (budgeted against 64 MiB physical VMEM).
        target_block_bytes = (8 << 20) if is_v7 else (2 << 20)
    vmem_limit_bytes = (48 << 20) if is_v7 else None

    # dtype-aware minimum sublane tile (f32: 8, bf16/f16: 16, int8/fp8: 32).
    sublane = 32 if itemsize == 1 else (16 if itemsize == 2 else 8)

    # ---- column (lane) tiling ----------------------------------------------
    if cols % 128 == 0:
        max_col_tile = max(128, (target_block_bytes // (sublane * itemsize)) // 128 * 128)
        col_tile = min(cols, max_col_tile)
    elif cols * sublane * itemsize <= target_block_bytes:
        # Full-width ragged-free blocks: one contiguous HBM DMA per row block,
        # zero lane-padding traffic (legal: block last dim == full array dim).
        col_tile = cols
    else:
        # Huge unaligned cols: 128-multiple tiles, ragged last col block.
        col_tile = max(128, (target_block_bytes // (sublane * itemsize)) // 128 * 128)
    nc_blocks = pl.cdiv(cols, col_tile)

    # ---- row (sublane) tiling to fill the block budget ----------------------
    max_row_tile = max(sublane,
                       (target_block_bytes // (col_tile * itemsize)) // sublane * sublane)
    row_tile = min(_round_up(rows, sublane), max_row_tile)
    nr_blocks = pl.cdiv(rows, row_tile)

    # ---- megacore: guarantee >=2 blocks on a parallel axis (v7x only) -------
    if multi_core and nr_blocks == 1 and nc_blocks == 1:
        if rows > sublane:
            row_tile = _round_up(pl.cdiv(rows, 2), sublane)
            nr_blocks = pl.cdiv(rows, row_tile)
        elif cols % 128 == 0 and cols >= 256:
            col_tile = _round_up(pl.cdiv(cols, 2), 128)
            nc_blocks = pl.cdiv(cols, col_tile)

    cp_kwargs = dict(dimension_semantics=("parallel", "parallel"))
    if vmem_limit_bytes is not None:
        cp_kwargs["vmem_limit_bytes"] = vmem_limit_bytes

    out = pl.pallas_call(
        _channel_uout_kernel,
        out_shape=jax.ShapeDtypeStruct((rows, cols), dtype),
        grid_spec=pl.GridSpec(
            grid=(nr_blocks, nc_blocks),
            in_specs=[
                pl.BlockSpec((row_tile, col_tile), lambda i, j: (i, j)),
                # Tiny per-row-block scale column; re-DMA'd only when the row
                # block index changes, fully hidden under the x DMA.
                pl.BlockSpec((row_tile, 1), lambda i, j: (i, 0)),
            ],
            out_specs=pl.BlockSpec((row_tile, col_tile), lambda i, j: (i, j)),
        ),
        compiler_params=pltpu.CompilerParams(**cp_kwargs),
        input_output_aliases=({0: 0} if in_place else {}),
    )(x2, scale2)

    return out.reshape(n, c, h, w)


if __name__ == "__main__":
    key = jax.random.PRNGKey(0)
    kx, kr = jax.random.split(key)
    p = 1.0

    # Small NCHW shape consistent with the module's conv-style input
    # (aligned path: H*W = 256 is a multiple of 128).
    N, C, H, W = 2, 4, 16, 16
    x = jax.random.normal(kx, (N, C, H, W), dtype=jnp.float32)
    out = jax.block_until_ready(channel_uout(x, kr, p=p, training=True))

    # Reference in plain JAX (same RNG draw as the kernel wrapper).
    r = jax.random.uniform(kr, (C,), minval=-p, maxval=p, dtype=jnp.float32)
    ref = x + x * r.reshape(1, C, 1, 1)
    assert out.shape == x.shape and out.dtype == x.dtype
    assert jnp.allclose(out, ref, atol=1e-6, rtol=1e-5)

    # Eval mode is identity.
    out_eval = jax.block_until_ready(channel_uout(x, kr, p=p, training=False))
    assert jnp.array_equal(out_eval, x)

    # Ragged kernel path: H*W = 400 (not a multiple of 128 -> full-width
    # blocks) and N*C = 6 (< sublane tile -> masked partial row block).
    x2 = jax.random.normal(kx, (2, 3, 20, 20), dtype=jnp.float32)
    out2 = jax.block_until_ready(channel_uout(x2, kr, p=p, training=True))
    r2 = jax.random.uniform(kr, (3,), minval=-p, maxval=p, dtype=jnp.float32)
    ref2 = x2 + x2 * r2.reshape(1, 3, 1, 1)
    assert jnp.allclose(out2, ref2, atol=1e-6, rtol=1e-5)

    # Tiny spatial map (7x7 -> 49 lanes): bypasses the kernel, XLA fuses the
    # broadcast multiply directly.
    x3 = jax.random.normal(kx, (2, 3, 7, 7), dtype=jnp.float32)
    out3 = jax.block_until_ready(channel_uout(x3, kr, p=p, training=True))
    ref3 = x3 + x3 * r2.reshape(1, 3, 1, 1)
    assert jnp.allclose(out3, ref3, atol=1e-6, rtol=1e-5)

    print("KERNEL_OK")
</pallas_src>

<mosaic_0001>
module attributes {stable_mosaic.version = 11 : i64} {
  func.func @_channel_uout_kernel(%arg0: i32, %arg1: i32, %arg2: memref<8x256xf32, #tpu.memory_space<vmem>>, %arg3: memref<8x1xf32, #tpu.memory_space<vmem>>, %arg4: memref<8x256xf32, #tpu.memory_space<vmem>>) attributes {dimension_semantics = [#tpu.dimension_semantics<parallel>, #tpu.dimension_semantics<parallel>], iteration_bounds = array<i64: 1, 1>, scalar_prefetch = 0 : i64, scratch_operands = 0 : i64, tpu.core_type = #tpu.core_type<tc>, window_params = [{transform_indices = @transform_0, window_bounds = array<i64: 8, 256>}, {transform_indices = @transform_1, window_bounds = array<i64: 8, 1>}, {transform_indices = @transform_2, window_bounds = array<i64: 8, 256>}]} {
    %c0 = arith.constant 0 : index
    %c0_0 = arith.constant 0 : index
    %0 = vector.load %arg2[%c0, %c0_0] : memref<8x256xf32, #tpu.memory_space<vmem>>, vector<8x256xf32>
    %c0_1 = arith.constant 0 : index
    %c0_2 = arith.constant 0 : index
    %1 = vector.load %arg3[%c0_1, %c0_2] : memref<8x1xf32, #tpu.memory_space<vmem>>, vector<8x1xf32>
    %2 = vector.broadcast %1 : vector<8x1xf32> to vector<8x256xf32>
    %3 = arith.mulf %0, %2 : vector<8x256xf32>
    %c0_3 = arith.constant 0 : index
    %c0_4 = arith.constant 0 : index
    %4 = vector.load %arg4[%c0_3, %c0_4] : memref<8x256xf32, #tpu.memory_space<vmem>>, vector<8x256xf32>
    tpu.vector_store %arg4[%c0_3, %c0_4], %3 {strides = array<i32>} : memref<8x256xf32, #tpu.memory_space<vmem>>, vector<8x256xf32>,
    return
  }
  func.func @transform_0(%arg0: i32, %arg1: i32) -> (i32, i32) {
    %c0_i32 = arith.constant 0 : i32
    return %arg0, %arg1 : i32, i32
  }
  func.func @transform_1(%arg0: i32, %arg1: i32) -> (i32, i32) {
    %c0_i32 = arith.constant 0 : i32
    %c0_i32_0 = arith.constant 0 : i32
    return %arg0, %c0_i32 : i32, i32
  }
  func.func @transform_2(%arg0: i32, %arg1: i32) -> (i32, i32) {
    %c0_i32 = arith.constant 0 : i32
    return %arg0, %arg1 : i32, i32
  }
}

</mosaic_0001>

<bundles_post_ra>
// kernel: tpu_custom_call.1
= control target key start
LH: loop header
LB: loop body
LE: loop exit
PB: predicated region body
PF: predicated region fallthrough
CT: control target
= control target key end

     0   :  { %7 = vsyncpa [#allocation3], 0  ;;  %s138_s0 = inlined_call_operand.hbm [shape: f32[8,256], index: 0, kind: input, shape index: {}]   ;;  %s139_s1 = inlined_call_operand.vmem [shape: f32[8,1], index: 1, kind: input, shape index: {}]   ;;  %s140_s2 = inlined_call_operand.hbm [shape: f32[8,256], index: 2, kind: output, shape index: {}]  }
   0x1   :  { %8 = vsyncpa [#allocation4], 0  ;;  %s14_s11 = sshll.u32 %s138_s0, 4  ;;  %s111_s12 = smov [#allocation2]   ;;  %s15_s11 = int_to_ptr.hbm [resolvable:$true] %s14_s11 }
   0x2   :  { %s16_s13 = sshll.u32 %s111_s12, 4  ;;  %s17_s13 = int_to_ptr.vmem [resolvable:$true] %s16_s13 }
   0x3   :  { %19 = dma.hbm_to_vmem [thread:$0]  %s15_s11, 256, %s17_s13, [#allocation3]  }
   0x4   :  { %107 = dma.done.wait [#allocation3], 256  }
   0x5   :  { %108 = vsyncadd [#allocation3], 4294967040  ;;  %v112_v0 = vmov 0   ;;  %v28_v1 = vld [vmem:[%s139_s1] sm:$0xff]  ;;  %v27_v3 = vld [vmem:[#allocation2 + $0x8] sm:$0xff]  ;;  %s113_s16 = smov [#allocation5]  }
   0x6   :  { %58 = vset.pattern.permute.xlu0 %v112_v0  ;;  %v26_v2 = vld [vmem:[#allocation2] sm:$0xff]  ;;  %s43_s17 = sshll.u32 %s113_s16, 4  ;;  %s45_s19 = sshll.u32 %s140_s2, 4  ;;  %s44_s17 = int_to_ptr.vmem [resolvable:$true] %s43_s17  ;;  %s46_s19 = int_to_ptr.hbm [resolvable:$true] %s45_s19 }
   0x7   :  { %31 = vperm.xlu0 %58, %v28_v1  }
  0x79   :  { %v32_v4 = vpop.permute.xlu0 %31 }
  0x7a   :  { %v34_v5 = vmul.f32 %v32_v4, %v26_v2  ;;  %v35_v6 = vmul.f32 %v32_v4, %v27_v3 }
  0x7c   :  { %36 = vst [vmem:[#allocation5] sm:$0xff] %v34_v5 }
  0x7d   :  { %37 = vst [vmem:[#allocation5 + $0x8] sm:$0xff] %v35_v6 }
  0x7e   :  { %48 = dma.vmem_to_hbm [thread:$0]  %s44_s17, 256, %s46_s19, [#allocation4]  }
  0x7f   :  { %109 = dma.done.wait [#allocation4], 256  }
  0x80   :  { %110 = vsyncadd [#allocation4], 4294967040 }
  0x81   :  { %53 = vsyncpa [#allocation3], 1 }
  0x82   :  { %54 = vsyncpa [#allocation4], 1 }

</bundles_post_ra>
